<compile_context>
chip_gen: v7x
topology: tpu7x:2x2x1
jax: 0.10.0
libtpu: 0.0.40
codegen_flags: <defaults>
</compile_context>

<pallas_src>
import math
import jax
import jax.numpy as jnp
from jax.experimental import pallas as pl
from jax.experimental.pallas import tpu as pltpu

EPS = 1e-5  # nn.GroupNorm default


def adagn_kernel(x_ref, gf_ref, bb_ref, amat_ref, o_ref):
    # x_ref:    (1, Ct, HW)  current (batch, channel-tile) slab
    # gf_ref:   (1, Ct, 1)   gamma * factor          (per-channel column)
    # bb_ref:   (1, Ct, 1)   bias + beta * factor    (per-channel column)
    # amat_ref: (Ct, Ct)     group-averaging matrix: A[i,j] = 1/(cg*HW) if same group
    xb = x_ref[0].astype(jnp.float32)                       # (Ct, HW)

    # --- group statistics: one traversal of the slab ---
    s = jnp.sum(xb, axis=1, keepdims=True)                  # (Ct, 1) per-channel sum
    ss = jnp.sum(xb * xb, axis=1, keepdims=True)            # (Ct, 1) per-channel sum of squares
    mean = jnp.dot(amat_ref[...], s,
                   preferred_element_type=jnp.float32)      # (Ct, 1) group mean
    ex2 = jnp.dot(amat_ref[...], ss,
                  preferred_element_type=jnp.float32)       # (Ct, 1) group E[x^2]
    var = jnp.maximum(ex2 - mean * mean, 0.0)               # (Ct, 1) group variance

    # --- fused GroupNorm-affine + adaptive modulation: one scale/shift pass ---
    scale = jax.lax.rsqrt(var + EPS) * gf_ref[0]            # (Ct, 1)
    shift = bb_ref[0] - mean * scale                        # (Ct, 1)
    o_ref[0] = (xb * scale + shift).astype(o_ref.dtype)


def _pick_c_tile(C, cg, HW, itemsize=4, block_budget_bytes=4 << 20):
    """Largest channel tile that divides C, keeps groups block-local, and bounds VMEM."""
    if C * HW * itemsize <= block_budget_bytes:
        return C
    # Tiles smaller than C must be multiples of the group size (block-local groups)
    # and of 8 (sublane alignment rule for the second-to-last block dim).
    step = cg * 8 // math.gcd(cg, 8)
    best = C
    t = step
    while t < C:
        if C % t == 0 and t * HW * itemsize <= block_budget_bytes:
            best = t
        t += step
    return best


def adagn_pallas(x, cond, w, b, gamma, beta, num_groups):
    """x: (B, C, H, W) float32; cond: (B, ctx) float32; w: (2C, ctx); b: (2C,)."""
    B, C, H, W = x.shape
    HW = H * W
    cg = C // num_groups
    assert C % num_groups == 0

    # --- hoisted conditioning projection (one dense XLA matmul) ---
    emb = cond @ w.T + b                                    # (B, 2C)
    factor = emb[:, :C]                                     # (B, C)
    bias_a = emb[:, C:]                                     # (B, C)
    # Fold GroupNorm affine into the adaptive modulation:
    #   out = ((x-mean)*inv*gamma + beta)*factor + bias
    #       = (x-mean)*inv*(gamma*factor) + (beta*factor + bias)
    gf = (factor * gamma[None, :]).reshape(B, C, 1)
    bb = (bias_a + factor * beta[None, :]).reshape(B, C, 1)

    x3 = x.reshape(B, C, HW)

    c_tile = _pick_c_tile(C, cg, HW, itemsize=x.dtype.itemsize)
    n_ct = C // c_tile

    # Group-averaging matrix for one channel tile (groups are tile-local).
    ch = jnp.arange(c_tile)
    same_group = (ch[:, None] // cg) == (ch[None, :] // cg)
    amat = same_group.astype(jnp.float32) / float(cg * HW)  # (c_tile, c_tile)

    # NOTE: assumes the usual aligned shapes (C multiple of 8 or full-slab tile,
    # HW a multiple of 128 or equal to the full array dim), as in typical
    # diffusion feature maps; unaligned lane padding is not masked here.
    out3 = pl.pallas_call(
        adagn_kernel,
        out_shape=jax.ShapeDtypeStruct((B, C, HW), x.dtype),
        grid_spec=pltpu.PrefetchScalarGridSpec(
            num_scalar_prefetch=0,
            grid=(B, n_ct),
            in_specs=[
                pl.BlockSpec((1, c_tile, HW), lambda bi, ti: (bi, ti, 0)),
                pl.BlockSpec((1, c_tile, 1), lambda bi, ti: (bi, ti, 0)),
                pl.BlockSpec((1, c_tile, 1), lambda bi, ti: (bi, ti, 0)),
                pl.BlockSpec((c_tile, c_tile), lambda bi, ti: (0, 0)),
            ],
            out_specs=pl.BlockSpec((1, c_tile, HW), lambda bi, ti: (bi, ti, 0)),
        ),
        compiler_params=pltpu.CompilerParams(
            dimension_semantics=("parallel", "parallel")),
    )(x3, gf, bb, amat)

    return out3.reshape(B, C, H, W)


def adagn_reference(x, cond, w, b, gamma, beta, num_groups):
    """Pure-JAX reference matching the PyTorch forward."""
    B, C, H, W = x.shape
    cg = C // num_groups
    emb = cond @ w.T + b                                     # (B, 2C)
    factor = emb[:, :C].reshape(B, C, 1, 1)
    bias = emb[:, C:].reshape(B, C, 1, 1)
    xg = x.reshape(B, num_groups, cg * H * W)
    mean = xg.mean(axis=-1, keepdims=True)
    var = ((xg - mean) ** 2).mean(axis=-1, keepdims=True)
    xn = ((xg - mean) / jnp.sqrt(var + EPS)).reshape(B, C, H, W)
    xn = xn * gamma.reshape(1, C, 1, 1) + beta.reshape(1, C, 1, 1)
    return xn * factor + bias


if __name__ == "__main__":
    B, C, H, W = 2, 8, 16, 16
    ctx_dim = 32
    num_groups = 4

    key = jax.random.PRNGKey(0)
    kx, kc, kw = jax.random.split(key, 3)

    x = jax.random.normal(kx, (B, C, H, W), dtype=jnp.float32)
    cond = jax.random.normal(kc, (B, ctx_dim), dtype=jnp.float32)

    # Deterministic param init, mirroring the PyTorch module:
    # dense(ctx_dim, 2C) with variance_scaling_init_ (fan_avg, scale=1.0), bias zeros,
    # then bias[:C] = 1, bias[C:] = 0.
    out_dim = 2 * C
    fan_avg = (ctx_dim + out_dim) / 2.0
    bound = math.sqrt(3.0 * (1.0 / max(1.0, fan_avg)))
    w = jax.random.uniform(kw, (out_dim, ctx_dim), dtype=jnp.float32,
                           minval=-bound, maxval=bound)       # (2C, ctx) like nn.Linear
    b = jnp.concatenate([jnp.ones((C,), jnp.float32),
                         jnp.zeros((C,), jnp.float32)])
    # GroupNorm affine params (default init: weight=1, bias=0)
    gamma = jnp.ones((C,), jnp.float32)
    beta = jnp.zeros((C,), jnp.float32)

    out = adagn_pallas(x, cond, w, b, gamma, beta, num_groups)
    out = jax.block_until_ready(out)

    ref = adagn_reference(x, cond, w, b, gamma, beta, num_groups)
    assert out.shape == (B, C, H, W)
    assert jnp.allclose(out, ref, atol=1e-4, rtol=1e-4)

    print("KERNEL_OK")
</pallas_src>

<mosaic_0001>
module attributes {stable_mosaic.version = 11 : i64} {
  func.func @adagn_kernel(%arg0: i32, %arg1: i32, %arg2: memref<1x8x256xf32, #tpu.memory_space<vmem>>, %arg3: memref<1x8x1xf32, #tpu.memory_space<vmem>>, %arg4: memref<1x8x1xf32, #tpu.memory_space<vmem>>, %arg5: memref<8x8xf32, #tpu.memory_space<vmem>>, %arg6: memref<1x8x256xf32, #tpu.memory_space<vmem>>) attributes {dimension_semantics = [#tpu.dimension_semantics<parallel>, #tpu.dimension_semantics<parallel>], iteration_bounds = array<i64: 2, 1>, scalar_prefetch = 0 : i64, scratch_operands = 0 : i64, tpu.core_type = #tpu.core_type<tc>, window_params = [{transform_indices = @transform_0, window_bounds = array<i64: 1, 8, 256>}, {transform_indices = @transform_1, window_bounds = array<i64: 1, 8, 1>}, {transform_indices = @transform_2, window_bounds = array<i64: 1, 8, 1>}, {pipeline_mode = #tpu.pipeline_mode<synchronous>, transform_indices = @transform_3, window_bounds = array<i64: 8, 8>}, {transform_indices = @transform_4, window_bounds = array<i64: 1, 8, 256>}]} {
    %c0 = arith.constant 0 : index
    %c0_0 = arith.constant 0 : index
    %c0_1 = arith.constant 0 : index
    %0 = vector.load %arg2[%c0, %c0_0, %c0_1] : memref<1x8x256xf32, #tpu.memory_space<vmem>>, vector<1x8x256xf32>
    %1 = vector.shape_cast %0 : vector<1x8x256xf32> to vector<8x256xf32>
    %cst = arith.constant dense<0.000000e+00> : vector<8xf32>
    %2 = vector.multi_reduction <add>, %1, %cst [1] : vector<8x256xf32> to vector<8xf32>
    %3 = vector.shape_cast %2 : vector<8xf32> to vector<8x1xf32>
    %4 = arith.mulf %1, %1 : vector<8x256xf32>
    %cst_2 = arith.constant dense<0.000000e+00> : vector<8xf32>
    %5 = vector.multi_reduction <add>, %4, %cst_2 [1] : vector<8x256xf32> to vector<8xf32>
    %6 = vector.shape_cast %5 : vector<8xf32> to vector<8x1xf32>
    %c0_3 = arith.constant 0 : index
    %c0_4 = arith.constant 0 : index
    %7 = vector.load %arg5[%c0_3, %c0_4] : memref<8x8xf32, #tpu.memory_space<vmem>>, vector<8x8xf32>
    %cst_5 = arith.constant dense<0.000000e+00> : vector<8x1xf32>
    %8 = tpu.matmul %7, %3, %cst_5 {dimension_numbers = #tpu.dot_dimension_numbers<[1], [0], [0], [1], [0, 0, 1, 1], [], []>} : vector<8x8xf32>, vector<8x1xf32>, vector<8x1xf32> -> vector<8x1xf32>
    %c0_6 = arith.constant 0 : index
    %c0_7 = arith.constant 0 : index
    %9 = vector.load %arg5[%c0_6, %c0_7] : memref<8x8xf32, #tpu.memory_space<vmem>>, vector<8x8xf32>
    %cst_8 = arith.constant dense<0.000000e+00> : vector<8x1xf32>
    %10 = tpu.matmul %9, %6, %cst_8 {dimension_numbers = #tpu.dot_dimension_numbers<[1], [0], [0], [1], [0, 0, 1, 1], [], []>} : vector<8x8xf32>, vector<8x1xf32>, vector<8x1xf32> -> vector<8x1xf32>
    %11 = arith.mulf %8, %8 : vector<8x1xf32>
    %12 = arith.subf %10, %11 : vector<8x1xf32>
    %cst_9 = arith.constant 0.000000e+00 : f32
    %13 = vector.broadcast %cst_9 : f32 to vector<8x1xf32>
    %14 = arith.maximumf %12, %13 : vector<8x1xf32>
    %cst_10 = arith.constant 9.99999974E-6 : f32
    %15 = vector.broadcast %cst_10 : f32 to vector<8x1xf32>
    %16 = arith.addf %14, %15 : vector<8x1xf32>
    %17 = math.rsqrt %16 : vector<8x1xf32>
    %c0_11 = arith.constant 0 : index
    %c0_12 = arith.constant 0 : index
    %c0_13 = arith.constant 0 : index
    %18 = vector.load %arg3[%c0_11, %c0_12, %c0_13] : memref<1x8x1xf32, #tpu.memory_space<vmem>>, vector<1x8x1xf32>
    %19 = vector.shape_cast %18 : vector<1x8x1xf32> to vector<8x1xf32>
    %20 = arith.mulf %17, %19 : vector<8x1xf32>
    %c0_14 = arith.constant 0 : index
    %c0_15 = arith.constant 0 : index
    %c0_16 = arith.constant 0 : index
    %21 = vector.load %arg4[%c0_14, %c0_15, %c0_16] : memref<1x8x1xf32, #tpu.memory_space<vmem>>, vector<1x8x1xf32>
    %22 = vector.shape_cast %21 : vector<1x8x1xf32> to vector<8x1xf32>
    %23 = arith.mulf %8, %20 : vector<8x1xf32>
    %24 = arith.subf %22, %23 : vector<8x1xf32>
    %25 = vector.broadcast %20 : vector<8x1xf32> to vector<8x256xf32>
    %26 = arith.mulf %1, %25 : vector<8x256xf32>
    %27 = vector.broadcast %24 : vector<8x1xf32> to vector<8x256xf32>
    %28 = arith.addf %26, %27 : vector<8x256xf32>
    %c0_17 = arith.constant 0 : index
    %c0_18 = arith.constant 0 : index
    %c0_19 = arith.constant 0 : index
    %29 = vector.load %arg6[%c0_17, %c0_18, %c0_19] : memref<1x8x256xf32, #tpu.memory_space<vmem>>, vector<1x8x256xf32>
    %30 = vector.shape_cast %29 : vector<1x8x256xf32> to vector<8x256xf32>
    %31 = vector.shape_cast %28 : vector<8x256xf32> to vector<1x8x256xf32>
    tpu.vector_store %arg6[%c0_17, %c0_18, %c0_19], %31 {strides = array<i32>} : memref<1x8x256xf32, #tpu.memory_space<vmem>>, vector<1x8x256xf32>,
    return
  }
  func.func @transform_0(%arg0: i32, %arg1: i32) -> (i32, i32, i32) {
    %c0_i32 = arith.constant 0 : i32
    %c0_i32_0 = arith.constant 0 : i32
    return %arg0, %arg1, %c0_i32 : i32, i32, i32
  }
  func.func @transform_1(%arg0: i32, %arg1: i32) -> (i32, i32, i32) {
    %c0_i32 = arith.constant 0 : i32
    %c0_i32_0 = arith.constant 0 : i32
    return %arg0, %arg1, %c0_i32 : i32, i32, i32
  }
  func.func @transform_2(%arg0: i32, %arg1: i32) -> (i32, i32, i32) {
    %c0_i32 = arith.constant 0 : i32
    %c0_i32_0 = arith.constant 0 : i32
    return %arg0, %arg1, %c0_i32 : i32, i32, i32
  }
  func.func @transform_3(%arg0: i32, %arg1: i32) -> (i32, i32) {
    %c0_i32 = arith.constant 0 : i32
    %c0_i32_0 = arith.constant 0 : i32
    %c0_i32_1 = arith.constant 0 : i32
    return %c0_i32, %c0_i32_0 : i32, i32
  }
  func.func @transform_4(%arg0: i32, %arg1: i32) -> (i32, i32, i32) {
    %c0_i32 = arith.constant 0 : i32
    %c0_i32_0 = arith.constant 0 : i32
    return %arg0, %arg1, %c0_i32 : i32, i32, i32
  }
}

</mosaic_0001>

<bundles_post_ra>
// kernel: tpu_custom_call.1
= control target key start
LH: loop header
LB: loop body
LE: loop exit
PB: predicated region body
PF: predicated region fallthrough
CT: control target
= control target key end

     0   :  { %9 = vsyncpa [#allocation3], 0  ;;  %s916_s0 = inlined_call_operand.vmem [shape: f32[2,8,256], index: 0, kind: input, shape index: {}]   ;;  %s917_s1 = inlined_call_operand.vmem [shape: f32[2,8,1], index: 1, kind: input, shape index: {}]   ;;  %s918_s2 = inlined_call_operand.vmem [shape: f32[2,8,1], index: 2, kind: input, shape index: {}]   ;;  %s919_s3 = inlined_call_operand.vmem [shape: f32[8,8], index: 3, kind: input, shape index: {}]   ;;  %s920_s4 = inlined_call_operand.hbm [shape: f32[2,8,256], index: 4, kind: output, shape index: {}]  }
   0x1   :  { %11 = vsyncpa [#allocation3 + $0x1], 0  ;;  %s791_s15 = smov 0   ;;  %s793_s16 = smov 0  }
   0x2   :  { %s795_s17 = smov 0   ;;  %s797_s18 = smov 0  }
   0x3   :  { %s799_s19 = smov 0   ;;  %s801_s20 = smov 0  }
   0x4 LB: > { %s587_s21 = sadd.s32 4294967295, %s760_s20   ;;  %s588_s22 = sadd.s32 4294967294, %s760_s20   ;;  %s760_s20 = sphi %s801_s20, %s17_s20   ;;  %s756_s19 = sphi %s799_s19, %s927_s19   ;;  %s752_s18 = sphi %s797_s18, %s926_s18   ;;  %s748_s17 = sphi %s795_s17, %s925_s17   ;;  %s744_s16 = sphi %s793_s16, %s924_s16   ;;  %s740_s15 = sphi %s791_s15, %s923_s15  }
   0x5   : > { %s29_s23 = sadd.s32 1, %s756_s19  ;;  %s143_s24 = sadd.s32 1, %s748_s17 }
   0x6   : > { %p31_p0 = scmp.ge.s32.totalorder %s29_s23, 2  ;;  %p153_p1 = scmp.ne.s32.totalorder %s748_s17, %s744_s16 }
   0x7   : > { %p154_p2 = scmp.eq.s32.totalorder %s587_s21, 1  ;;  %p159_p3 = scmp.ne.s32.totalorder %s744_s16, %s740_s15 }
   0x8   : > { %s929_s23 = smov (%p31_p0, %s29_s23), 0  ;;  %p160_p5 = scmp.eq.s32.totalorder %s588_s22, 1 }
   0x9   : > { %p831_p4 = por %p154_p2, %p153_p1  ;;  %s138_s26 = ssub.s32 %s756_s19, %s929_s23 }
   0xa   : > { %p591_p6 = scmp.ge.s32.totalorder %s760_s20, 1  ;;  %p141_p7 = scmp.eq.s32.totalorder %s138_s26, 0 }
   0xb   : > { %p838_p8 = por %p160_p5, %p159_p3  ;;  %p213_p9 = scmp.lt.s32.totalorder %s760_s20, 3 }
   0xc   : > { %s844_s28 = scalar_select %p141_p7, %s748_s17, %s143_s24  }
   0xd   : > { %p214_p10 = pnand %p591_p6, %p213_p9 }
   0xe   : > { %p257_p11 = scmp.lt.s32.totalorder (!%p214_p10), %s752_s18, 1  ;;  %v762_v0 = vmov (!%p214_p10), 0.0   ;;  %vm763_vm0 = vmmov (!%p214_p10), 0   ;;  %v290_v7 = vld [vmem:[%s919_s3] sm:$0xff] (!%p214_p10)  ;;  %vm291_vm1 = vcmask (!%p214_p10), 64512   ;;  %v764_v10 = vmov (!%p214_p10), 0  }
   0xf   : > { %217 = sbr.rel (%p214_p10) target bundleno = 555 (0x22b), region = 36  ;;  %610 = vmatprep.subr.mxu0 (!%p214_p10), %v762_v0  ;;  %615 = vmatprep.subr.mxu1 (!%p214_p10), %v762_v0  ;;  %s254_s24 = sand.u32 (!%p214_p10), 1, %s744_s16  }
  0x10   : > { %612 = vmatprep.mubr.msk.f32.mxu0 (!%p214_p10), %vm763_vm0, %v762_v0  ;;  %617 = vmatprep.mubr.msk.f32.mxu1 (!%p214_p10), %vm763_vm0, %v762_v0  ;;  %s592_s26 = sshll.u32 (!%p214_p10), %s254_s24, 4 }
  0x11   : > { %678 = vset.pattern.permute.xlu1 (!%p214_p10), %v764_v10  ;;  %679 = vset.pattern.permute.xlu0 (!%p214_p10), %v764_v10 }
  0x16   : > { %s848_s29 = scalar_select %p257_p11, %s752_s18, 1 }
  0x18   : > { %s604_s30 = sshll.u32 %s848_s29, 4  ;;  %s595_s10 = sshll.u32 %s848_s29, 3 }
  0x19   : > { %s265_s7 = scalar_lea.vmem %s916_s0, %s604_s30  ;;  %s272_s13 = scalar_lea.vmem %s917_s1, %s595_s10 }
  0x1a   : > { %v280_v1 = vld [vmem:[%s265_s7] sm:$0xff]  ;;  %v281_v2 = vld [vmem:[%s265_s7 + $0x8] sm:$0xff]  ;;  %s279_s22 = scalar_lea.vmem %s918_s2, %s595_s10  ;;  %s605_s29 = sshll.u32 %s752_s18, 8 }
  0x1b   : > { %v282_v3 = vadd.f32 %v281_v2, %v280_v1  ;;  %v285_v4 = vmul.f32 %v280_v1, %v280_v1  ;;  %v286_v5 = vmul.f32 %v281_v2, %v281_v2  ;;  %v440_v19 = vld [vmem:[%s272_s13] sm:$0xff]  ;;  %s256_s30 = scalar_lea.vmem [#allocation2], %s592_s26  ;;  %s869_s8 = scalar_lea.hbm %s920_s4, %s605_s29 }
  0x1c   : > { %v442_v22 = vld [vmem:[%s279_s22] sm:$0xff]  ;;  %s478_s5 = sshll.u32 %s256_s30, 4  ;;  %s462_s18 = scalar_lea.sflag [#allocation3], %s254_s24  ;;  %s871_s5 = int_to_ptr.vmem [resolvable:$true] %s478_s5 }
  0x1d   : > { %283 = vadd.xlane.f32.xlu0 %v282_v3  ;;  %v287_v6 = vadd.f32 %v286_v5, %v285_v4  ;;  %s682_s9 = scalar_lea.vmem %s871_s5, 256  ;;  %s765_s10 = smov [#allocation2]  }
  0x1e   : > { %p683_p12 = scmp.ne.s32.totalorder %s871_s5, %s682_s9  ;;  %s686_s11 = sshll.u32 %s765_s10, 4  ;;  %s687_s11 = int_to_ptr.vmem [resolvable:$false] %s686_s11 }
  0x1f   : > { %s688_s12 = scalar_lea.vmem %s687_s11, 512  ;;  %p689_p1 = scmp.lt.s32.totalorder %s871_s5, %s687_s11 }
  0x20   : > { %p684_p13 = pnand %p683_p12, %p831_p4  ;;  %p690_p2 = scmp.lt.s32.totalorder %s688_s12, %s682_s9 }
  0x21   : > { %288 = vadd.xlane.f32.xlu0 %v287_v6 }
  0x22   : > { %p685_p0 = pneg %p684_p13  ;;  %p691_p3 = por %p690_p2, %p689_p1 }
  0x24   : > { %p692_p5 = pnand %p691_p3, %p685_p0 }
  0xaa   : > { %v284_v8 = vpop.xlane.xlu0 %283 }
  0xab   : > { %611 = vmatpush3.msra.mxu0 %v284_v8 }
  0xac   : > { %613 = vmatmul.mubr.msk.f32.vlgmr.msra.gmra.mrb[0].mxu0 %vm291_vm1, %v290_v7 }
  0xae   : > { %v289_v9 = vpop.xlane.xlu0 %288 }
  0xaf   : > { %616 = vmatpush3.msra.mxu1 %v289_v9 }
  0xb0   : > { %618 = vmatmul.mubr.msk.f32.vlgmr.msra.gmra.mrb[0].mxu1 %vm291_vm1, %v290_v7 }
 0x17f   : > { %v361_v11 = vpop.f32.mrb[0].mxu0 }
 0x180   : > { %v435_v12 = vmul.f32 %v361_v11, %v361_v11  ;;  %v614_v13 = vpop.f32.mrb[1].mxu0 }
 0x183   : > { %v431_v14 = vpop.f32.mrb[0].mxu1 }
 0x184   : > { %v436_v15 = vsub.f32 %v431_v14, %v435_v12  ;;  %v619_v16 = vpop.f32.mrb[1].mxu1 }
 0x186   : > { %v437_v17 = vmax.f32 %v436_v15, 0.0 }
 0x188   : > { %v438_v18 = vadd.f32 1e-05, %v437_v17 }
 0x18a   : > { %680 = vrsqrt.f32 %v438_v18 }
 0x194   : > { %v681_v20 = vpop.eup %680 }
 0x195   : > { %v441_v21 = vmul.f32 %v681_v20, %v440_v19 }
 0x197   : > { %447 = vperm.xlu1 %678, %v441_v21   ;;  %v443_v23 = vmul.f32 %v441_v21, %v361_v11 }
 0x199   : > { %v444_v24 = vsub.f32 %v442_v22, %v443_v23 }
 0x19b   : > { %454 = vperm.xlu1 %678, %v444_v24  }
 0x216   : > { %v448_v25 = vpop.permute.xlu1 %447 }
 0x217   : > { %v450_v26 = vmul.f32 %v448_v25, %v280_v1  ;;  %v451_v27 = vmul.f32 %v448_v25, %v281_v2 }
 0x21a   : > { %v455_v28 = vpop.permute.xlu1 %454 }
 0x21b   : > { %v457_v29 = vadd.f32 %v455_v28, %v450_v26  ;;  %v458_v30 = vadd.f32 %v455_v28, %v451_v27 }
 0x21d   : > { %459 = vst [vmem:[%s256_s30] sm:$0xff] %v457_v29  ;;  %460 = vst [vmem:[%s256_s30 + $0x8] sm:$0xff] %v458_v30 }
 0x21e   : > { %695 = shalt.err (!%p692_p5)
}
 0x21f   : > { %s696_s13 = scalar_lea.hbm %s869_s8, 256  ;;  %s700_s22 = scalar_lea.hbm %s920_s4, 512 }
 0x220   : > { %p697_p6 = scmp.ne.s32.totalorder %s869_s8, %s696_s13  ;;  %p701_p10 = scmp.lt.u32.totalorder %s869_s8, %s920_s4 }
 0x221   : > { %p702_p11 = scmp.lt.u32.totalorder %s700_s22, %s696_s13  ;;  %p704_p13 = scmp.lt.u32.totalorder %s696_s13, %s869_s8 }
 0x222   : > { %p698_p7 = pnand %p697_p6, %p831_p4 }
 0x223   : > { %p703_p12 = por %p702_p11, %p701_p10 }
 0x224   : > { %p699_p9 = pneg %p698_p7 }
 0x225   : > { %p705_p0 = por %p704_p13, %p703_p12 }
 0x227   : > { %p706_p1 = pnand %p705_p0, %p699_p9 }
 0x229   : > { %709 = shalt.err (!%p706_p1)
}
 0x22a   : > { %620 = dma.vmem_to_hbm [thread:$0]  (%p831_p4), %s871_s5, 256, %s869_s8, %s462_s18  }
 0x22b PF: > { %p626_p2 = scmp.ge.s32.totalorder %s760_s20, 2  ;;  %s490_s29 = sand.u32 1, %s740_s15  }
 0x22c   : > { %s491_s30 = scalar_lea.sflag [#allocation3], %s490_s29 }
 0x22d   : > { %p623_p3 = pnand %p626_p2, %p838_p8 }
 0x22f   : > { %735 = dma.done.wait (!%p623_p3), %s491_s30, 256  }
 0x230   : > { %737 = vsyncadd (!%p623_p3), %s491_s30, 4294967040  ;;  %s17_s20 = sadd.s32 1, %s760_s20   ;;  %s923_s15 = smov %s744_s16 }
 0x231   : > { %p14_p5 = scmp.ge.s32.totalorder %s17_s20, 4   ;;  %s924_s16 = smov %s748_s17 }
 0x232   : > { %s925_s17 = smov %s844_s28  ;;  %s926_s18 = smov %s756_s19 }
 0x233   : > { %s927_s19 = smov %s929_s23  ;;  %16 = sbr.rel (!%p14_p5) target bundleno = 4 (0x4), region = 77 }
 0x23a   :  { %496 = vsyncpa [#allocation3], 1 }
 0x23b   :  { %498 = vsyncpa [#allocation3 + $0x1], 1 }

</bundles_post_ra>
